<compile_context>
chip_gen: v5e
topology: v5e:2x2
jax: 0.10.0
libtpu: 0.0.40
codegen_flags: <defaults>
</compile_context>

<pallas_src>
import functools

import jax
import jax.numpy as jnp
from jax import lax
from jax.experimental import pallas as pl
from jax.experimental.pallas import tpu as pltpu


def _round_up(x, m):
    return ((x + m - 1) // m) * m


# ----------------------------------------------------------------------------
# Pallas kernel: one deep MXU matmul per row tile + fused bias (+ ReLU).
# ----------------------------------------------------------------------------
def _matmul_bias_act_kernel(apply_relu, p_ref, w_ref, b_ref, o_ref):
    acc = jnp.dot(p_ref[...], w_ref[...], preferred_element_type=jnp.float32)
    y = acc + b_ref[...]
    if apply_relu:
        y = jnp.maximum(y, 0.0)
    o_ref[...] = y.astype(o_ref.dtype)


def _pick_row_tile(m, kc, cout, vmem_budget=32 * 1024 * 1024):
    """Largest row tile that fits the VMEM budget, then shrunk so the row axis
    has >= 2 tiles when possible (lets v7x shard across its 2 TensorCores)."""
    tm = 1024
    while tm > 16:
        need = (2 * tm * kc * 2        # double-buffered bf16 patch tiles
                + kc * cout * 2        # resident bf16 weights
                + 2 * tm * cout * 4    # double-buffered output tiles (f32 worst)
                + tm * cout * 4        # headroom for the f32 matmul result
                + 2 * 8 * cout * 4)    # bias
        if need <= vmem_budget:
            break
        tm //= 2
    while tm > 16 and pl.cdiv(m, tm) < 2:
        tm //= 2
    return tm, _round_up(m, tm)


def conv_as_matmul(patches, weight, bias, *, relu, out_dtype=jnp.float32):
    """relu_opt(patches @ weight + bias) as a single tiled Pallas kernel.

    patches: [M, Kc]  (BN scale already folded into `weight`)
    weight : [Kc, Cout] float32, bias: [Cout] float32.
    Returns [M, Cout] in `out_dtype`.
    """
    m, kc_raw = patches.shape
    cout_raw = weight.shape[-1]

    kc = _round_up(kc_raw, 128)      # lane-dense contraction dim
    cout = _round_up(cout_raw, 128)  # lane-dense output dim (unmasked stores)
    tm, m_pad = _pick_row_tile(m, kc, cout)

    p = jnp.pad(patches.astype(jnp.bfloat16),
                ((0, m_pad - m), (0, kc - kc_raw)))
    w = jnp.pad(weight.astype(jnp.bfloat16),
                ((0, kc - kc_raw), (0, cout - cout_raw)))
    b = jnp.pad(bias.astype(jnp.float32), (0, cout - cout_raw)).reshape(1, cout)

    out_bytes = m_pad * cout * jnp.dtype(out_dtype).itemsize
    cost = pl.CostEstimate(
        flops=2 * m_pad * kc * cout,
        transcendentals=0,
        bytes_accessed=p.size * 2 + w.size * 2 + b.size * 4 + out_bytes,
    )

    out = pl.pallas_call(
        functools.partial(_matmul_bias_act_kernel, relu),
        out_shape=jax.ShapeDtypeStruct((m_pad, cout), out_dtype),
        grid_spec=pltpu.PrefetchScalarGridSpec(
            num_scalar_prefetch=0,
            grid=(m_pad // tm,),
            in_specs=[
                pl.BlockSpec((tm, kc), lambda i: (i, 0)),    # patch row tile
                pl.BlockSpec((kc, cout), lambda i: (0, 0)),  # weights: resident
                pl.BlockSpec((1, cout), lambda i: (0, 0)),   # bias: resident
            ],
            out_specs=pl.BlockSpec((tm, cout), lambda i: (i, 0)),
        ),
        compiler_params=pltpu.CompilerParams(
            dimension_semantics=("parallel",),
            vmem_limit_bytes=48 * 1024 * 1024,
        ),
        cost_estimate=cost,
    )(p, w, b)
    return out[:m, :cout_raw]


# ----------------------------------------------------------------------------
# Plain-JAX glue: im2col for a 3x3x3 conv (padding=1), lane-packed [M, 27*C].
# ----------------------------------------------------------------------------
def im2col_3x3x3(x_ndhwc, stride):
    n, d, h, w, c = x_ndhwc.shape
    pad, ks = 1, 3
    xp = jnp.pad(x_ndhwc, ((0, 0), (pad, pad), (pad, pad), (pad, pad), (0, 0)))
    do = (d + 2 * pad - ks) // stride + 1
    ho = (h + 2 * pad - ks) // stride + 1
    wo = (w + 2 * pad - ks) // stride + 1
    taps = []
    for kd in range(ks):
        for kh in range(ks):
            for kw in range(ks):
                taps.append(xp[
                    :,
                    kd: kd + stride * (do - 1) + 1: stride,
                    kh: kh + stride * (ho - 1) + 1: stride,
                    kw: kw + stride * (wo - 1) + 1: stride,
                    :,
                ])
    patches = jnp.concatenate(taps, axis=-1)          # [N,Do,Ho,Wo, 27*C]
    return patches.reshape(n * do * ho * wo, ks ** 3 * c), (n, do, ho, wo)


# ----------------------------------------------------------------------------
# Parameters (deterministic init), BN folding, forward.
# ----------------------------------------------------------------------------
def fold_bn(gamma, beta, mean, var, eps=1e-5):
    scale = gamma / jnp.sqrt(var + eps)
    bias = beta - mean * scale
    return scale, bias


def init_params(key, in_planes, planes):
    keys = jax.random.split(key, 6)

    def conv_w(k, taps, cin, cout):
        fan_in = taps * cin
        return jax.random.normal(k, (taps, cin, cout), jnp.float32) / jnp.sqrt(fan_in)

    def bn_params(k, c):
        k0, k1, k2, k3 = jax.random.split(k, 4)
        gamma = 1.0 + 0.1 * jax.random.normal(k0, (c,), jnp.float32)
        beta = 0.1 * jax.random.normal(k1, (c,), jnp.float32)
        mean = 0.1 * jax.random.normal(k2, (c,), jnp.float32)
        var = 0.5 + jax.random.uniform(k3, (c,), jnp.float32)
        return fold_bn(gamma, beta, mean, var)

    p = {}
    p["w1"] = conv_w(keys[0], 27, in_planes, planes)   # conv3x3x3
    p["w2"] = conv_w(keys[1], 27, planes, planes)      # conv3x3x3
    p["wd"] = conv_w(keys[2], 1, in_planes, planes)    # conv1x1x1 (downsample)
    p["s1"], p["b1"] = bn_params(keys[3], planes)
    p["s2"], p["b2"] = bn_params(keys[4], planes)
    p["sd"], p["bd"] = bn_params(keys[5], planes)
    return p


def folded_weights(params):
    """Flatten conv weights to [Kc, Cout] and fold BN scale into them."""
    planes = params["w1"].shape[-1]
    w1 = params["w1"].reshape(-1, planes) * params["s1"][None, :]
    w2 = params["w2"].reshape(-1, planes) * params["s2"][None, :]
    wd = params["wd"].reshape(-1, planes) * params["sd"][None, :]
    return w1, w2, wd, params["b1"], params["b2"], params["bd"]


def basic_block_forward(x_ndhwc, params, stride=1):
    n, d, h, w, cin = x_ndhwc.shape
    planes = params["w1"].shape[-1]
    w1, w2, wd, b1, b2, bd = folded_weights(params)

    x_bf = x_ndhwc.astype(jnp.bfloat16)

    # conv1 + bn1 + relu  (single fused matmul kernel)
    p1, (nn, do, ho, wo) = im2col_3x3x3(x_bf, stride)
    m = nn * do * ho * wo
    out1 = conv_as_matmul(p1, w1, b1, relu=True, out_dtype=jnp.bfloat16)
    out1 = out1.reshape(nn, do, ho, wo, planes)

    # conv2 + bn2 fused with the downsample (1x1x1 conv + BN) residual + relu:
    #   relu([im2col(out1) | x_strided] @ [[w2*s2],[wd*sd]] + (b2 + bd))
    p2, _ = im2col_3x3x3(out1, 1)                                  # [M, 27*planes]
    xs = x_bf[:, ::stride, ::stride, ::stride, :].reshape(m, cin)  # [M, Cin]
    patches2 = jnp.concatenate([p2, xs], axis=-1)
    weight2 = jnp.concatenate([w2, wd], axis=0)
    out2 = conv_as_matmul(patches2, weight2, b2 + bd, relu=True,
                          out_dtype=jnp.float32)
    return out2.reshape(nn, do, ho, wo, planes)


# ----------------------------------------------------------------------------
# Pure-JAX reference (lax.conv, same bf16-input / f32-accumulate semantics).
# ----------------------------------------------------------------------------
def ref_forward(x_ndhwc, params, stride=1):
    w1, w2, wd, b1, b2, bd = folded_weights(params)

    def conv3d(x, w_flat, ksize, stride, pad):
        cin = w_flat.shape[0] // ksize ** 3
        cout = w_flat.shape[1]
        wk = w_flat.reshape(ksize, ksize, ksize, cin, cout)
        return lax.conv_general_dilated(
            x.astype(jnp.bfloat16), wk.astype(jnp.bfloat16),
            window_strides=(stride,) * 3,
            padding=[(pad, pad)] * 3,
            dimension_numbers=("NDHWC", "DHWIO", "NDHWC"),
            preferred_element_type=jnp.float32,
        )

    residual = conv3d(x_ndhwc, wd, 1, stride, 0) + bd
    out = jnp.maximum(conv3d(x_ndhwc, w1, 3, stride, 1) + b1, 0.0)
    out = conv3d(out, w2, 3, 1, 1) + b2
    return jnp.maximum(out + residual, 0.0)


if __name__ == "__main__":
    key = jax.random.PRNGKey(0)
    kx, kp = jax.random.split(key)

    # PyTorch-style NCDHW input, small shapes.
    N, Cin, D, H, W = 2, 4, 4, 8, 8
    planes = 8

    x_ncdhw = jax.random.normal(kx, (N, Cin, D, H, W), jnp.float32)
    x_ndhwc = jnp.transpose(x_ncdhw, (0, 2, 3, 4, 1))
    params = init_params(kp, Cin, planes)

    fwd = jax.jit(basic_block_forward, static_argnames=("stride",))

    for stride in (1, 2):
        out = jax.block_until_ready(fwd(x_ndhwc, params, stride=stride))
        ref = jax.block_until_ready(ref_forward(x_ndhwc, params, stride=stride))
        assert out.shape == ref.shape, (out.shape, ref.shape)
        max_err = float(jnp.max(jnp.abs(out - ref)))
        if max_err > 2e-2:
            raise AssertionError(
                f"Pallas output mismatch (stride={stride}), max abs err = {max_err}")

    print("KERNEL_OK")
</pallas_src>

<mosaic_0001>
module attributes {stable_mosaic.version = 11 : i64} {
  func.func @_matmul_bias_act_kernel(%arg0: i32, %arg1: memref<256x128xbf16, #tpu.memory_space<vmem>>, %arg2: memref<128x128xbf16, #tpu.memory_space<vmem>>, %arg3: memref<1x128xf32, #tpu.memory_space<vmem>>, %arg4: memref<256x128xbf16, #tpu.memory_space<vmem>>) attributes {dimension_semantics = [#tpu.dimension_semantics<parallel>], iteration_bounds = array<i64: 2>, scalar_prefetch = 0 : i64, scratch_operands = 0 : i64, tpu.core_type = #tpu.core_type<tc>, window_params = [{transform_indices = @transform_0, window_bounds = array<i64: 256, 128>}, {pipeline_mode = #tpu.pipeline_mode<synchronous>, transform_indices = @transform_1, window_bounds = array<i64: 128, 128>}, {pipeline_mode = #tpu.pipeline_mode<synchronous>, transform_indices = @transform_2, window_bounds = array<i64: 1, 128>}, {transform_indices = @transform_3, window_bounds = array<i64: 256, 128>}]} {
    %c0 = arith.constant 0 : index
    %c0_0 = arith.constant 0 : index
    %0 = vector.load %arg1[%c0, %c0_0] : memref<256x128xbf16, #tpu.memory_space<vmem>>, vector<256x128xbf16>
    %c0_1 = arith.constant 0 : index
    %c0_2 = arith.constant 0 : index
    %1 = vector.load %arg2[%c0_1, %c0_2] : memref<128x128xbf16, #tpu.memory_space<vmem>>, vector<128x128xbf16>
    %cst = arith.constant dense<0.000000e+00> : vector<256x128xf32>
    %2 = tpu.matmul %0, %1, %cst {dimension_numbers = #tpu.dot_dimension_numbers<[1], [0], [0], [1], [0, 0, 1, 1], [], []>} : vector<256x128xbf16>, vector<128x128xbf16>, vector<256x128xf32> -> vector<256x128xf32>
    %c0_3 = arith.constant 0 : index
    %c0_4 = arith.constant 0 : index
    %3 = vector.load %arg3[%c0_3, %c0_4] : memref<1x128xf32, #tpu.memory_space<vmem>>, vector<1x128xf32>
    %4 = vector.broadcast %3 : vector<1x128xf32> to vector<256x128xf32>
    %5 = arith.addf %2, %4 : vector<256x128xf32>
    %cst_5 = arith.constant 0.000000e+00 : f32
    %6 = vector.broadcast %cst_5 : f32 to vector<256x128xf32>
    %7 = arith.maximumf %5, %6 : vector<256x128xf32>
    %8 = arith.truncf %7 : vector<256x128xf32> to vector<256x128xbf16>
    %c0_6 = arith.constant 0 : index
    %c0_7 = arith.constant 0 : index
    %9 = vector.load %arg4[%c0_6, %c0_7] : memref<256x128xbf16, #tpu.memory_space<vmem>>, vector<256x128xbf16>
    tpu.vector_store %arg4[%c0_6, %c0_7], %8 {strides = array<i32>} : memref<256x128xbf16, #tpu.memory_space<vmem>>, vector<256x128xbf16>,
    return
  }
  func.func @transform_0(%arg0: i32) -> (i32, i32) {
    %c0_i32 = arith.constant 0 : i32
    %c0_i32_0 = arith.constant 0 : i32
    return %arg0, %c0_i32 : i32, i32
  }
  func.func @transform_1(%arg0: i32) -> (i32, i32) {
    %c0_i32 = arith.constant 0 : i32
    %c0_i32_0 = arith.constant 0 : i32
    %c0_i32_1 = arith.constant 0 : i32
    return %c0_i32, %c0_i32_0 : i32, i32
  }
  func.func @transform_2(%arg0: i32) -> (i32, i32) {
    %c0_i32 = arith.constant 0 : i32
    %c0_i32_0 = arith.constant 0 : i32
    %c0_i32_1 = arith.constant 0 : i32
    return %c0_i32, %c0_i32_0 : i32, i32
  }
  func.func @transform_3(%arg0: i32) -> (i32, i32) {
    %c0_i32 = arith.constant 0 : i32
    %c0_i32_0 = arith.constant 0 : i32
    return %arg0, %c0_i32 : i32, i32
  }
}

module attributes {stable_mosaic.version = 11 : i64} {
  func.func @_matmul_bias_act_kernel(%arg0: i32, %arg1: memref<256x256xbf16, #tpu.memory_space<vmem>>, %arg2: memref<256x128xbf16, #tpu.memory_space<vmem>>, %arg3: memref<1x128xf32, #tpu.memory_space<vmem>>, %arg4: memref<256x128xf32, #tpu.memory_space<vmem>>) attributes {dimension_semantics = [#tpu.dimension_semantics<parallel>], iteration_bounds = array<i64: 2>, scalar_prefetch = 0 : i64, scratch_operands = 0 : i64, tpu.core_type = #tpu.core_type<tc>, window_params = [{transform_indices = @transform_0, window_bounds = array<i64: 256, 256>}, {pipeline_mode = #tpu.pipeline_mode<synchronous>, transform_indices = @transform_1, window_bounds = array<i64: 256, 128>}, {pipeline_mode = #tpu.pipeline_mode<synchronous>, transform_indices = @transform_2, window_bounds = array<i64: 1, 128>}, {transform_indices = @transform_3, window_bounds = array<i64: 256, 128>}]} {
    %c0 = arith.constant 0 : index
    %c0_0 = arith.constant 0 : index
    %0 = vector.load %arg1[%c0, %c0_0] : memref<256x256xbf16, #tpu.memory_space<vmem>>, vector<256x256xbf16>
    %c0_1 = arith.constant 0 : index
    %c0_2 = arith.constant 0 : index
    %1 = vector.load %arg2[%c0_1, %c0_2] : memref<256x128xbf16, #tpu.memory_space<vmem>>, vector<256x128xbf16>
    %cst = arith.constant dense<0.000000e+00> : vector<256x128xf32>
    %2 = tpu.matmul %0, %1, %cst {dimension_numbers = #tpu.dot_dimension_numbers<[1], [0], [0], [1], [0, 0, 1, 1], [], []>} : vector<256x256xbf16>, vector<256x128xbf16>, vector<256x128xf32> -> vector<256x128xf32>
    %c0_3 = arith.constant 0 : index
    %c0_4 = arith.constant 0 : index
    %3 = vector.load %arg3[%c0_3, %c0_4] : memref<1x128xf32, #tpu.memory_space<vmem>>, vector<1x128xf32>
    %4 = vector.broadcast %3 : vector<1x128xf32> to vector<256x128xf32>
    %5 = arith.addf %2, %4 : vector<256x128xf32>
    %cst_5 = arith.constant 0.000000e+00 : f32
    %6 = vector.broadcast %cst_5 : f32 to vector<256x128xf32>
    %7 = arith.maximumf %5, %6 : vector<256x128xf32>
    %c0_6 = arith.constant 0 : index
    %c0_7 = arith.constant 0 : index
    %8 = vector.load %arg4[%c0_6, %c0_7] : memref<256x128xf32, #tpu.memory_space<vmem>>, vector<256x128xf32>
    tpu.vector_store %arg4[%c0_6, %c0_7], %7 {strides = array<i32>} : memref<256x128xf32, #tpu.memory_space<vmem>>, vector<256x128xf32>,
    return
  }
  func.func @transform_0(%arg0: i32) -> (i32, i32) {
    %c0_i32 = arith.constant 0 : i32
    %c0_i32_0 = arith.constant 0 : i32
    return %arg0, %c0_i32 : i32, i32
  }
  func.func @transform_1(%arg0: i32) -> (i32, i32) {
    %c0_i32 = arith.constant 0 : i32
    %c0_i32_0 = arith.constant 0 : i32
    %c0_i32_1 = arith.constant 0 : i32
    return %c0_i32, %c0_i32_0 : i32, i32
  }
  func.func @transform_2(%arg0: i32) -> (i32, i32) {
    %c0_i32 = arith.constant 0 : i32
    %c0_i32_0 = arith.constant 0 : i32
    %c0_i32_1 = arith.constant 0 : i32
    return %c0_i32, %c0_i32_0 : i32, i32
  }
  func.func @transform_3(%arg0: i32) -> (i32, i32) {
    %c0_i32 = arith.constant 0 : i32
    %c0_i32_0 = arith.constant 0 : i32
    return %arg0, %c0_i32 : i32, i32
  }
}

</mosaic_0001>

<bundles_post_ra>
// kernel: basic_block_forward.2
= control target key start
LH: loop header
LB: loop body
LE: loop exit
PB: predicated region body
PF: predicated region fallthrough
CT: control target
= control target key end

     0   :  { %s898_s12 = smov 0   ;;  %s1019_s0 = inlined_call_operand.vmem [shape: bf16[512,128], index: 0, kind: input, shape index: {}]   ;;  %s1020_s1 = inlined_call_operand.vmem [shape: bf16[128,128], index: 1, kind: input, shape index: {}]   ;;  %s1021_s2 = inlined_call_operand.vmem [shape: f32[1,128], index: 2, kind: input, shape index: {}]   ;;  %s1022_s3 = inlined_call_operand.vmem [shape: bf16[512,128], index: 3, kind: output, shape index: {}]  }
   0x1 LB: > { %s611_s13 = sadd.s32 4294967295, %s876_s12   ;;  %p615_p0 = scmp.ge.s32.totalorder %s876_s12, 1  ;;  %s876_s12 = sphi %s898_s12, %s13_s12  }
   0x2   : > { %p138_p1 = scmp.lt.s32.totalorder %s876_s12, 3 }
   0x4   : > { %p139_p2 = pnand %p615_p0, %p138_p1 }
   0x5   : > { %s616_s22 = sshll.u32 (!%p139_p2), %s611_s13, 5 }
   0x6   : > { %142 = sbr.rel (%p139_p2) target bundleno = 240 (0xf0), region = 32  ;;  %p163_p3 = scmp.lt.s32.totalorder (!%p139_p2), %s616_s22, 63 }
   0xb   : > { %v741_v0 = vld [vmem:[%s1020_s1 + $0x38] sm:$0xff]  ;;  %v740_v1 = vld [vmem:[%s1020_s1 + $0x30] sm:$0xff]  ;;  %v739_v2 = vld [vmem:[%s1020_s1 + $0x28] sm:$0xff]  ;;  %s1024_s22 = smov (!%p163_p3, %s616_s22), 63 }
   0xc   : > { %370 = vmatpush.bf16.msra.mxu0 %v741_v0  ;;  %837 = vmatpush.bf16.msra.mxu1 %v741_v0  ;;  %v738_v3 = vld [vmem:[%s1020_s1 + $0x20] sm:$0xff]  ;;  %v737_v4 = vld [vmem:[%s1020_s1 + $0x18] sm:$0xff]  ;;  %v736_v5 = vld [vmem:[%s1020_s1 + $0x10] sm:$0xff]  ;;  %s617_s29 = sshll.u32 %s1024_s22, 2 }
   0xd   : > { %838 = vmatpush.bf16.msra.mxu2 %v741_v0  ;;  %839 = vmatpush.bf16.msra.mxu3 %v741_v0  ;;  %v735_v6 = vld [vmem:[%s1020_s1 + $0x8] sm:$0xff]  ;;  %v734_v7 = vld [vmem:[%s1020_s1] sm:$0xff]  ;;  %s938_s7 = scalar_lea.vmem %s1019_s0, %s617_s29  ;;  %s970_s13 = scalar_lea.vmem %s1022_s3, %s617_s29 }
   0xe   : > { %v718_v8 = vld [vmem:[%s938_s7] sm:$0xff]  ;;  %v719_v12 = vld [vmem:[%s938_s7 + $0x8] sm:$0xff]  ;;  %v720_v16 = vld [vmem:[%s938_s7 + $0x10] sm:$0xff] }
   0xf   : > { %v722_v9 = vld [vmem:[%s938_s7 + $0x20] sm:$0xff]  ;;  %v723_v13 = vld [vmem:[%s938_s7 + $0x28] sm:$0xff]  ;;  %v724_v17 = vld [vmem:[%s938_s7 + $0x30] sm:$0xff] }
  0x10   : > { %371 = vmatpush.bf16.msra.mxu0 %v740_v1  ;;  %840 = vmatpush.bf16.msra.mxu1 %v740_v1  ;;  %v726_v10 = vld [vmem:[%s938_s7 + $0x40] sm:$0xff]  ;;  %v727_v14 = vld [vmem:[%s938_s7 + $0x48] sm:$0xff]  ;;  %v728_v18 = vld [vmem:[%s938_s7 + $0x50] sm:$0xff] }
  0x11   : > { %841 = vmatpush.bf16.msra.mxu2 %v740_v1  ;;  %842 = vmatpush.bf16.msra.mxu3 %v740_v1  ;;  %v730_v11 = vld [vmem:[%s938_s7 + $0x60] sm:$0xff]  ;;  %v731_v15 = vld [vmem:[%s938_s7 + $0x68] sm:$0xff]  ;;  %v732_v19 = vld [vmem:[%s938_s7 + $0x70] sm:$0xff] }
  0x12   : > { %v721_v20 = vld [vmem:[%s938_s7 + $0x18] sm:$0xff]  ;;  %v959_v26 = vld [vmem:[%s1021_s2] ss:$0 sm:$0xff] }
  0x13   : > { %v725_v21 = vld [vmem:[%s938_s7 + $0x38] sm:$0xff] }
  0x14   : > { %372 = vmatpush.bf16.msra.mxu0 %v739_v2  ;;  %843 = vmatpush.bf16.msra.mxu1 %v739_v2  ;;  %v729_v22 = vld [vmem:[%s938_s7 + $0x58] sm:$0xff] }
  0x15   : > { %844 = vmatpush.bf16.msra.mxu2 %v739_v2  ;;  %845 = vmatpush.bf16.msra.mxu3 %v739_v2  ;;  %v733_v23 = vld [vmem:[%s938_s7 + $0x78] sm:$0xff] }
  0x18   : > { %373 = vmatpush.bf16.msra.mxu0 %v738_v3  ;;  %846 = vmatpush.bf16.msra.mxu1 %v738_v3 }
  0x19   : > { %847 = vmatpush.bf16.msra.mxu2 %v738_v3  ;;  %848 = vmatpush.bf16.msra.mxu3 %v738_v3 }
  0x1c   : > { %374 = vmatpush.bf16.msra.mxu0 %v737_v4  ;;  %849 = vmatpush.bf16.msra.mxu1 %v737_v4 }
  0x1d   : > { %850 = vmatpush.bf16.msra.mxu2 %v737_v4  ;;  %851 = vmatpush.bf16.msra.mxu3 %v737_v4 }
  0x20   : > { %375 = vmatpush.bf16.msra.mxu0 %v736_v5  ;;  %852 = vmatpush.bf16.msra.mxu1 %v736_v5 }
  0x21   : > { %853 = vmatpush.bf16.msra.mxu2 %v736_v5  ;;  %854 = vmatpush.bf16.msra.mxu3 %v736_v5 }
  0x24   : > { %376 = vmatpush.bf16.msra.mxu0 %v735_v6  ;;  %855 = vmatpush.bf16.msra.mxu1 %v735_v6 }
  0x25   : > { %856 = vmatpush.bf16.msra.mxu2 %v735_v6  ;;  %857 = vmatpush.bf16.msra.mxu3 %v735_v6 }
  0x28   : > { %377 = vmatpush.bf16.msra.mxu0 %v734_v7  ;;  %858 = vmatpush.bf16.msra.mxu1 %v734_v7 }
  0x29   : > { %859 = vmatpush.bf16.msra.mxu2 %v734_v7  ;;  %860 = vmatpush.bf16.msra.mxu3 %v734_v7 }
  0x2b   : > { %378 = vmatmul.bf16.vlgmr.msra.gmra.mxu0 %v718_v8  ;;  %398 = vmatmul.bf16.vlgmr.msra.gmra.mxu1 %v722_v9 }
  0x2c   : > { %418 = vmatmul.bf16.vlgmr.msra.gmra.mxu2 %v726_v10  ;;  %438 = vmatmul.bf16.vlgmr.msra.gmra.mxu3 %v730_v11 }
  0x3b   : > { %383 = vmatmul.bf16.gmra.mxu0 %v719_v12  ;;  %403 = vmatmul.bf16.gmra.mxu1 %v723_v13 }
  0x3c   : > { %423 = vmatmul.bf16.gmra.mxu2 %v727_v14  ;;  %443 = vmatmul.bf16.gmra.mxu3 %v731_v15 }
  0x4b   : > { %388 = vmatmul.bf16.gmra.mxu0 %v720_v16  ;;  %408 = vmatmul.bf16.gmra.mxu1 %v724_v17 }
  0x4c   : > { %428 = vmatmul.bf16.gmra.mxu2 %v728_v18  ;;  %448 = vmatmul.bf16.gmra.mxu3 %v732_v19 }
  0x5b   : > { %393 = vmatmul.bf16.gmra.mxu0 %v721_v20  ;;  %413 = vmatmul.bf16.gmra.mxu1 %v725_v21 }
  0x5c   : > { %433 = vmatmul.bf16.gmra.mxu2 %v729_v22  ;;  %453 = vmatmul.bf16.gmra.mxu3 %v733_v23 }
  0xa8   : > { %v379_v24 = vpop.f32.mrf.mxu0  ;;  %v399_v25 = vpop.f32.mrf.mxu1 }
  0xa9   : > { %v380_v27 = vadd.f32 %v959_v26, %v379_v24  ;;  %v400_v28 = vadd.f32 %v959_v26, %v399_v25 }
  0xab   : > { %v459_v35 = vmax.f32 %v380_v27, 0.0  ;;  %v467_v36 = vmax.f32 %v400_v28, 0.0 }
  0xaf   : > { %v419_v29 = vpop.f32.mrf.mxu2  ;;  %v439_v30 = vpop.f32.mrf.mxu3 }
  0xb0   : > { %v381_v31 = vpop.f32.mrf.mxu0  ;;  %v401_v32 = vpop.f32.mrf.mxu1  ;;  %v420_v41 = vadd.f32 %v959_v26, %v419_v29  ;;  %v440_v42 = vadd.f32 %v959_v26, %v439_v30 }
  0xb1   : > { %v382_v33 = vadd.f32 %v959_v26, %v381_v31  ;;  %v402_v34 = vadd.f32 %v959_v26, %v401_v32 }
  0xb2   : > { %v475_v49 = vmax.f32 %v420_v41, 0.0  ;;  %v483_v50 = vmax.f32 %v440_v42, 0.0 }
  0xb3   : > { %v460_v37 = vmax.f32 %v382_v33, 0.0  ;;  %v468_v38 = vmax.f32 %v402_v34, 0.0 }
  0xb5   : > { %v745_v39 = vpack.c.bf16 %v460_v37, %v459_v35  ;;  %v765_v40 = vpack.c.bf16 %v468_v38, %v467_v36 }
  0xb7   : > { %746 = vst [vmem:[%s970_s13] sm:$0xff] %v745_v39   ;;  %v421_v43 = vpop.f32.mrf.mxu2  ;;  %v441_v44 = vpop.f32.mrf.mxu3 }
  0xb8   : > { %825 = vst [vmem:[%s970_s13 + $0x20] sm:$0xff] %v765_v40   ;;  %v422_v45 = vadd.f32 %v959_v26, %v421_v43  ;;  %v442_v46 = vadd.f32 %v959_v26, %v441_v44  ;;  %v384_v47 = vpop.f32.mrf.mxu0  ;;  %v404_v48 = vpop.f32.mrf.mxu1 }
  0xb9   : > { %v385_v55 = vadd.f32 %v959_v26, %v384_v47  ;;  %v405_v56 = vadd.f32 %v959_v26, %v404_v48 }
  0xba   : > { %v476_v51 = vmax.f32 %v422_v45, 0.0  ;;  %v484_v52 = vmax.f32 %v442_v46, 0.0 }
  0xbb   : > { %v461_v63 = vmax.f32 %v385_v55, 0.0  ;;  %v469_v0 = vmax.f32 %v405_v56, 0.0 }
  0xbc   : > { %v785_v53 = vpack.c.bf16 %v476_v51, %v475_v49  ;;  %v805_v54 = vpack.c.bf16 %v484_v52, %v483_v50 }
  0xbe   : > { %829 = vst [vmem:[%s970_s13 + $0x40] sm:$0xff] %v785_v53  }
  0xbf   : > { %833 = vst [vmem:[%s970_s13 + $0x60] sm:$0xff] %v805_v54   ;;  %v424_v57 = vpop.f32.mrf.mxu2  ;;  %v444_v58 = vpop.f32.mrf.mxu3 }
  0xc0   : > { %v386_v59 = vpop.f32.mrf.mxu0  ;;  %v406_v60 = vpop.f32.mrf.mxu1  ;;  %v425_v5 = vadd.f32 %v959_v26, %v424_v57  ;;  %v445_v6 = vadd.f32 %v959_v26, %v444_v58 }
  0xc1   : > { %v387_v61 = vadd.f32 %v959_v26, %v386_v59  ;;  %v407_v62 = vadd.f32 %v959_v26, %v406_v60 }
  0xc2   : > { %v477_v13 = vmax.f32 %v425_v5, 0.0  ;;  %v485_v14 = vmax.f32 %v445_v6, 0.0 }
  0xc3   : > { %v462_v1 = vmax.f32 %v387_v61, 0.0  ;;  %v470_v2 = vmax.f32 %v407_v62, 0.0 }
  0xc5   : > { %v750_v3 = vpack.c.bf16 %v462_v1, %v461_v63  ;;  %v770_v4 = vpack.c.bf16 %v470_v2, %v469_v0 }
  0xc7   : > { %822 = vst [vmem:[%s970_s13 + $0x8] sm:$0xff] %v750_v3   ;;  %v426_v7 = vpop.f32.mrf.mxu2  ;;  %v446_v8 = vpop.f32.mrf.mxu3 }
  0xc8   : > { %826 = vst [vmem:[%s970_s13 + $0x28] sm:$0xff] %v770_v4   ;;  %v427_v9 = vadd.f32 %v959_v26, %v426_v7  ;;  %v447_v10 = vadd.f32 %v959_v26, %v446_v8  ;;  %v389_v11 = vpop.f32.mrf.mxu0  ;;  %v409_v12 = vpop.f32.mrf.mxu1 }
  0xc9   : > { %v390_v19 = vadd.f32 %v959_v26, %v389_v11  ;;  %v410_v20 = vadd.f32 %v959_v26, %v409_v12 }
  0xca   : > { %v478_v15 = vmax.f32 %v427_v9, 0.0  ;;  %v486_v16 = vmax.f32 %v447_v10, 0.0 }
  0xcb   : > { %v463_v28 = vmax.f32 %v390_v19, 0.0  ;;  %v471_v29 = vmax.f32 %v410_v20, 0.0 }
  0xcc   : > { %v790_v17 = vpack.c.bf16 %v478_v15, %v477_v13  ;;  %v810_v18 = vpack.c.bf16 %v486_v16, %v485_v14 }
  0xce   : > { %830 = vst [vmem:[%s970_s13 + $0x48] sm:$0xff] %v790_v17  }
  0xcf   : > { %834 = vst [vmem:[%s970_s13 + $0x68] sm:$0xff] %v810_v18   ;;  %v429_v21 = vpop.f32.mrf.mxu2  ;;  %v449_v22 = vpop.f32.mrf.mxu3 }
  0xd0   : > { %v391_v23 = vpop.f32.mrf.mxu0  ;;  %v411_v24 = vpop.f32.mrf.mxu1  ;;  %v430_v34 = vadd.f32 %v959_v26, %v429_v21  ;;  %v450_v35 = vadd.f32 %v959_v26, %v449_v22 }
  0xd1   : > { %v392_v25 = vadd.f32 %v959_v26, %v391_v23  ;;  %v412_v27 = vadd.f32 %v959_v26, %v411_v24 }
  0xd2   : > { %v479_v42 = vmax.f32 %v430_v34, 0.0  ;;  %v487_v43 = vmax.f32 %v450_v35, 0.0 }
  0xd3   : > { %v464_v30 = vmax.f32 %v392_v25, 0.0  ;;  %v472_v31 = vmax.f32 %v412_v27, 0.0 }
  0xd5   : > { %v755_v32 = vpack.c.bf16 %v464_v30, %v463_v28  ;;  %v775_v33 = vpack.c.bf16 %v472_v31, %v471_v29 }
  0xd7   : > { %823 = vst [vmem:[%s970_s13 + $0x10] sm:$0xff] %v755_v32   ;;  %v431_v36 = vpop.f32.mrf.mxu2  ;;  %v451_v37 = vpop.f32.mrf.mxu3 }
  0xd8   : > { %827 = vst [vmem:[%s970_s13 + $0x30] sm:$0xff] %v775_v33   ;;  %v432_v38 = vadd.f32 %v959_v26, %v431_v36  ;;  %v452_v39 = vadd.f32 %v959_v26, %v451_v37  ;;  %v394_v40 = vpop.f32.mrf.mxu0  ;;  %v414_v41 = vpop.f32.mrf.mxu1 }
  0xd9   : > { %v395_v48 = vadd.f32 %v959_v26, %v394_v40  ;;  %v415_v49 = vadd.f32 %v959_v26, %v414_v41 }
  0xda   : > { %v480_v44 = vmax.f32 %v432_v38, 0.0  ;;  %v488_v45 = vmax.f32 %v452_v39, 0.0 }
  0xdb   : > { %v465_v56 = vmax.f32 %v395_v48, 0.0  ;;  %v473_v57 = vmax.f32 %v415_v49, 0.0 }
  0xdc   : > { %v795_v46 = vpack.c.bf16 %v480_v44, %v479_v42  ;;  %v815_v47 = vpack.c.bf16 %v488_v45, %v487_v43 }
  0xde   : > { %831 = vst [vmem:[%s970_s13 + $0x50] sm:$0xff] %v795_v46  }
  0xdf   : > { %835 = vst [vmem:[%s970_s13 + $0x70] sm:$0xff] %v815_v47   ;;  %v434_v50 = vpop.f32.mrf.mxu2  ;;  %v454_v51 = vpop.f32.mrf.mxu3 }
  0xe0   : > { %v396_v52 = vpop.f32.mrf.mxu0  ;;  %v416_v53 = vpop.f32.mrf.mxu1  ;;  %v435_v62 = vadd.f32 %v959_v26, %v434_v50  ;;  %v455_v63 = vadd.f32 %v959_v26, %v454_v51 }
  0xe1   : > { %v397_v54 = vadd.f32 %v959_v26, %v396_v52  ;;  %v417_v55 = vadd.f32 %v959_v26, %v416_v53 }
  0xe2   : > { %v481_v4 = vmax.f32 %v435_v62, 0.0  ;;  %v489_v5 = vmax.f32 %v455_v63, 0.0 }
  0xe3   : > { %v466_v58 = vmax.f32 %v397_v54, 0.0  ;;  %v474_v59 = vmax.f32 %v417_v55, 0.0 }
  0xe5   : > { %v760_v60 = vpack.c.bf16 %v466_v58, %v465_v56  ;;  %v780_v61 = vpack.c.bf16 %v474_v59, %v473_v57 }
  0xe7   : > { %824 = vst [vmem:[%s970_s13 + $0x18] sm:$0xff] %v760_v60   ;;  %v436_v0 = vpop.f32.mrf.mxu2  ;;  %v456_v1 = vpop.f32.mrf.mxu3 }
  0xe8   : > { %828 = vst [vmem:[%s970_s13 + $0x38] sm:$0xff] %v780_v61   ;;  %v437_v2 = vadd.f32 %v959_v26, %v436_v0  ;;  %v457_v3 = vadd.f32 %v959_v26, %v456_v1 }
  0xea   : > { %v482_v6 = vmax.f32 %v437_v2, 0.0  ;;  %v490_v7 = vmax.f32 %v457_v3, 0.0 }
  0xec   : > { %v800_v8 = vpack.c.bf16 %v482_v6, %v481_v4  ;;  %v820_v9 = vpack.c.bf16 %v490_v7, %v489_v5 }
  0xee   : > { %832 = vst [vmem:[%s970_s13 + $0x58] sm:$0xff] %v800_v8  }
  0xef   : > { %836 = vst [vmem:[%s970_s13 + $0x78] sm:$0xff] %v820_v9  }
  0xf0 PF: > { %s13_s12 = sadd.s32 1, %s876_s12  }
  0xf1   : > { %p10_p4 = scmp.ge.s32.totalorder %s13_s12, 4  }
  0xf3   :  { %12 = sbr.rel (!%p10_p4) target bundleno = 1 (0x1), region = 62 }

// kernel: basic_block_forward.3
= control target key start
LH: loop header
LB: loop body
LE: loop exit
PB: predicated region body
PF: predicated region fallthrough
CT: control target
= control target key end

     0   :  { %8 = vsyncpa [#allocation3], 0  ;;  %s1492_s0 = inlined_call_operand.vmem [shape: bf16[512,256], index: 0, kind: input, shape index: {}]   ;;  %s1493_s1 = inlined_call_operand.vmem [shape: bf16[256,128], index: 1, kind: input, shape index: {}]   ;;  %s1494_s2 = inlined_call_operand.vmem [shape: f32[1,128], index: 2, kind: input, shape index: {}]   ;;  %s1495_s3 = inlined_call_operand.hbm [shape: f32[512,128], index: 3, kind: output, shape index: {}]  }
   0x1   :  { %10 = vsyncpa [#allocation3 + $0x1], 0  ;;  %s1218_s12 = smov 0   ;;  %s1220_s13 = smov 0  }
   0x2   :  { %s1222_s14 = smov 0   ;;  %s1224_s15 = smov 0  }
   0x3 LB: > { %s1239_s16 = sadd.s32 4294967295, %s1194_s15   ;;  %s819_s17 = sadd.s32 4294967294, %s1194_s15   ;;  %s1194_s15 = sphi %s1224_s15, %s1501_s15   ;;  %s1190_s14 = sphi %s1222_s14, %s1500_s14   ;;  %s1186_s13 = sphi %s1220_s13, %s1499_s13   ;;  %s1182_s12 = sphi %s1218_s12, %s1498_s12  }
   0x4   : > { %s1243_s18 = sadd.s32 1, %s1194_s15   ;;  %s91_s19 = sadd.s32 1, %s1190_s14 }
   0x5   : > { %s88_s20 = ssub.s32 %s1194_s15, %s1243_s18  ;;  %p101_p0 = scmp.ne.s32.totalorder %s1190_s14, %s1186_s13 }
   0x6   : > { %p89_p1 = scmp.eq.s32.totalorder %s88_s20, 0  ;;  %p102_p2 = scmp.eq.s32.totalorder %s1239_s16, 1 }
   0x7   : > { %p107_p3 = scmp.ne.s32.totalorder %s1186_s13, %s1182_s12  ;;  %p108_p4 = scmp.eq.s32.totalorder %s819_s17, 1 }
   0x8   : > { %s1254_s21 = scalar_select %p89_p1, %s1190_s14, %s91_s19  }
   0x9   : > { %p1256_p5 = por %p102_p2, %p101_p0  ;;  %p1260_p6 = por %p108_p4, %p107_p3 }
   0xa   : > { %p822_p7 = scmp.ge.s32.totalorder %s1194_s15, 1  ;;  %p142_p8 = scmp.lt.s32.totalorder %s1194_s15, 3 }
   0xc   : > { %p143_p9 = pnand %p822_p7, %p142_p8 }
   0xd   : > { %s824_s9 = sshll.u32 (!%p143_p9), %s1239_s16, 5  ;;  %s164_s27 = sand.u32 (!%p143_p9), 1, %s1186_s13  }
   0xe   : > { %146 = sbr.rel (%p143_p9) target bundleno = 313 (0x139), region = 32  ;;  %p168_p10 = scmp.lt.s32.totalorder (!%p143_p9), %s824_s9, 63 }
   0xf   : > { %s823_s28 = sshll.u32 (!%p143_p9), %s164_s27, 8  ;;  %s1073_s30 = sshll.u32 (!%p143_p9), %s1239_s16, 8 }
  0x10   : > { %s1393_s29 = scalar_lea.vmem (!%p143_p9), [#allocation2], %s823_s28  ;;  %s753_s6 = scalar_lea.hbm (!%p143_p9), %s1495_s3, %s1073_s30 }
  0x11   : > { %s754_s7 = sshll.u32 (!%p143_p9), %s1393_s29, 4  ;;  %s756_s8 = sshll.u32 (!%p143_p9), %s753_s6, 4  ;;  %s755_s7 = int_to_ptr.vmem [resolvable:$true] %s754_s7  ;;  %s757_s8 = int_to_ptr.hbm [resolvable:$true] %s756_s8 }
  0x12   : > { %s742_s16 = scalar_lea.sflag (!%p143_p9), [#allocation3], %s164_s27  ;;  %s1152_s19 = scalar_lea.hbm (!%p143_p9), %s1495_s3, 512 }
  0x13   : > { %v1064_v0 = vld [vmem:[%s1493_s1 + $0x38] sm:$0xff]  ;;  %v1063_v2 = vld [vmem:[%s1493_s1 + $0x30] sm:$0xff]  ;;  %v1062_v4 = vld [vmem:[%s1493_s1 + $0x28] sm:$0xff]  ;;  %s1503_s9 = smov (!%p168_p10, %s824_s9), 63 }
  0x14   : > { %v1072_v1 = vld [vmem:[%s1493_s1 + $0x78] sm:$0xff]  ;;  %499 = vmatpush.bf16.msra.mxu0 %v1064_v0  ;;  %1074 = vmatpush.bf16.msra.mxu2 %v1064_v0  ;;  %v1071_v3 = vld [vmem:[%s1493_s1 + $0x70] sm:$0xff]  ;;  %v1070_v5 = vld [vmem:[%s1493_s1 + $0x68] sm:$0xff]  ;;  %s1024_s4 = sshll.u32 %s1503_s9, 3 }
  0x15   : > { %588 = vmatpush.bf16.msra.mxu1 %v1072_v1  ;;  %1082 = vmatpush.bf16.msra.mxu3 %v1072_v1  ;;  %v1061_v6 = vld [vmem:[%s1493_s1 + $0x20] sm:$0xff]  ;;  %v1060_v8 = vld [vmem:[%s1493_s1 + $0x18] sm:$0xff]  ;;  %v1059_v10 = vld [vmem:[%s1493_s1 + $0x10] sm:$0xff]  ;;  %s1309_s10 = scalar_lea.vmem %s1492_s0, %s1024_s4 }
  0x16   : > { %v1069_v7 = vld [vmem:[%s1493_s1 + $0x60] sm:$0xff]  ;;  %v1068_v9 = vld [vmem:[%s1493_s1 + $0x58] sm:$0xff]  ;;  %v1067_v11 = vld [vmem:[%s1493_s1 + $0x50] sm:$0xff] }
  0x17   : > { %v1058_v12 = vld [vmem:[%s1493_s1 + $0x8] sm:$0xff]  ;;  %v1057_v14 = vld [vmem:[%s1493_s1] sm:$0xff]  ;;  %v837_v28 = vld [vmem:[%s1309_s10 + $0x10] sm:$0xf] }
  0x18   : > { %500 = vmatpush.bf16.msra.mxu0 %v1063_v2  ;;  %1075 = vmatpush.bf16.msra.mxu2 %v1063_v2  ;;  %v1066_v13 = vld [vmem:[%s1493_s1 + $0x48] sm:$0xff]  ;;  %v1065_v15 = vld [vmem:[%s1493_s1 + $0x40] sm:$0xff]  ;;  %v1028_v29 = vld [vmem:[%s1309_s10 + $0x14] sm:$0xf0] }
  0x19   : > { %589 = vmatpush.bf16.msra.mxu1 %v1071_v3  ;;  %1083 = vmatpush.bf16.msra.mxu3 %v1071_v3  ;;  %v829_v16 = vld [vmem:[%s1309_s10] sm:$0xf]  ;;  %v1026_v17 = vld [vmem:[%s1309_s10 + $0x4] sm:$0xf0]  ;;  %v1025_v20 = vld [vmem:[%s1309_s10 + $0x4] sm:$0xf]  ;;  %v838_v36 = vor.u32 %v1028_v29, %v837_v28 }
  0x1a   : > { %v893_v18 = vld [vmem:[%s1309_s10 + $0x80] sm:$0xf]  ;;  %v1042_v19 = vld [vmem:[%s1309_s10 + $0x84] sm:$0xf0]  ;;  %v831_v21 = vld [vmem:[%s1309_s10 + $0x8] sm:$0xf0]  ;;  %v830_v24 = vor.u32 %v1026_v17, %v829_v16 }
  0x1b   : > { %v1041_v22 = vld [vmem:[%s1309_s10 + $0x84] sm:$0xf]  ;;  %v895_v23 = vld [vmem:[%s1309_s10 + $0x88] sm:$0xf0]  ;;  %v894_v25 = vor.u32 %v1042_v19, %v893_v18  ;;  %v834_v26 = vor.u32 %v1025_v20, %v831_v21  ;;  %v901_v30 = vld [vmem:[%s1309_s10 + $0x90] sm:$0xf] }
  0x1c   : > { %501 = vmatpush.bf16.msra.mxu0 %v1062_v4  ;;  %1076 = vmatpush.bf16.msra.mxu2 %v1062_v4  ;;  %v898_v27 = vor.u32 %v1041_v22, %v895_v23  ;;  %v1044_v31 = vld [vmem:[%s1309_s10 + $0x94] sm:$0xf0]  ;;  %v1027_v32 = vld [vmem:[%s1309_s10 + $0x14] sm:$0xf]  ;;  %v839_v33 = vld [vmem:[%s1309_s10 + $0x18] sm:$0xf0] }
  0x1d   : > { %590 = vmatpush.bf16.msra.mxu1 %v1070_v5  ;;  %1084 = vmatpush.bf16.msra.mxu3 %v1070_v5  ;;  %v1043_v34 = vld [vmem:[%s1309_s10 + $0x94] sm:$0xf]  ;;  %v903_v35 = vld [vmem:[%s1309_s10 + $0x98] sm:$0xf0]  ;;  %v902_v37 = vor.u32 %v1044_v31, %v901_v30  ;;  %v842_v38 = vor.u32 %v1027_v32, %v839_v33  ;;  %v845_v40 = vld [vmem:[%s1309_s10 + $0x20] sm:$0xf] }
  0x1e   : > { %v906_v39 = vor.u32 %v1043_v34, %v903_v35  ;;  %v1030_v41 = vld [vmem:[%s1309_s10 + $0x24] sm:$0xf0]  ;;  %v909_v42 = vld [vmem:[%s1309_s10 + $0xa0] sm:$0xf]  ;;  %v1029_v44 = vld [vmem:[%s1309_s10 + $0x24] sm:$0xf] }
  0x1f   : > { %v1046_v43 = vld [vmem:[%s1309_s10 + $0xa4] sm:$0xf0]  ;;  %v847_v45 = vld [vmem:[%s1309_s10 + $0x28] sm:$0xf0]  ;;  %v1045_v46 = vld [vmem:[%s1309_s10 + $0xa4] sm:$0xf]  ;;  %v846_v48 = vor.u32 %v1030_v41, %v845_v40 }
  0x20   : > { %502 = vmatpush.bf16.msra.mxu0 %v1061_v6  ;;  %1077 = vmatpush.bf16.msra.mxu2 %v1061_v6  ;;  %v911_v47 = vld [vmem:[%s1309_s10 + $0xa8] sm:$0xf0]  ;;  %v910_v49 = vor.u32 %v1046_v43, %v909_v42  ;;  %v850_v50 = vor.u32 %v1029_v44, %v847_v45  ;;  %v853_v52 = vld [vmem:[%s1309_s10 + $0x30] sm:$0xf]  ;;  %v1032_v53 = vld [vmem:[%s1309_s10 + $0x34] sm:$0xf0] }
  0x21   : > { %591 = vmatpush.bf16.msra.mxu1 %v1069_v7  ;;  %1085 = vmatpush.bf16.msra.mxu3 %v1069_v7  ;;  %v914_v51 = vor.u32 %v1045_v46, %v911_v47  ;;  %v917_v54 = vld [vmem:[%s1309_s10 + $0xb0] sm:$0xf]  ;;  %v1048_v55 = vld [vmem:[%s1309_s10 + $0xb4] sm:$0xf0]  ;;  %v1031_v56 = vld [vmem:[%s1309_s10 + $0x34] sm:$0xf]  ;;  %v854_v60 = vor.u32 %v1032_v53, %v853_v52 }
  0x22   : > { %v855_v57 = vld [vmem:[%s1309_s10 + $0x38] sm:$0xf0]  ;;  %v1047_v58 = vld [vmem:[%s1309_s10 + $0xb4] sm:$0xf]  ;;  %v918_v61 = vor.u32 %v1048_v55, %v917_v54  ;;  %v861_v0 = vld [vmem:[%s1309_s10 + $0x40] sm:$0xf] }
  0x23   : > { %v919_v59 = vld [vmem:[%s1309_s10 + $0xb8] sm:$0xf0]  ;;  %v858_v62 = vor.u32 %v1031_v56, %v855_v57  ;;  %v1034_v1 = vld [vmem:[%s1309_s10 + $0x44] sm:$0xf0]  ;;  %v925_v2 = vld [vmem:[%s1309_s10 + $0xc0] sm:$0xf] }
  0x24   : > { %503 = vmatpush.bf16.msra.mxu0 %v1060_v8  ;;  %1078 = vmatpush.bf16.msra.mxu2 %v1060_v8  ;;  %v922_v63 = vor.u32 %v1047_v58, %v919_v59  ;;  %v1050_v3 = vld [vmem:[%s1309_s10 + $0xc4] sm:$0xf0]  ;;  %v1033_v4 = vld [vmem:[%s1309_s10 + $0x44] sm:$0xf]  ;;  %v863_v5 = vld [vmem:[%s1309_s10 + $0x48] sm:$0xf0]  ;;  %v862_v8 = vor.u32 %v1034_v1, %v861_v0 }
  0x25   : > { %592 = vmatpush.bf16.msra.mxu1 %v1068_v9  ;;  %1086 = vmatpush.bf16.msra.mxu3 %v1068_v9  ;;  %v1049_v6 = vld [vmem:[%s1309_s10 + $0xc4] sm:$0xf]  ;;  %v927_v7 = vld [vmem:[%s1309_s10 + $0xc8] sm:$0xf0]  ;;  %v926_v9 = vor.u32 %v1050_v3, %v925_v2  ;;  %v1035_v16 = vld [vmem:[%s1309_s10 + $0x54] sm:$0xf] }
  0x26   : > { %v871_v17 = vld [vmem:[%s1309_s10 + $0x58] sm:$0xf0]  ;;  %v1051_v18 = vld [vmem:[%s1309_s10 + $0xd4] sm:$0xf]  ;;  %v1037_v28 = vld [vmem:[%s1309_s10 + $0x64] sm:$0xf] }
  0x27   : > { %v935_v19 = vld [vmem:[%s1309_s10 + $0xd8] sm:$0xf0]  ;;  %v874_v22 = vor.u32 %v1035_v16, %v871_v17  ;;  %v879_v29 = vld [vmem:[%s1309_s10 + $0x68] sm:$0xf0]  ;;  %v1053_v30 = vld [vmem:[%s1309_s10 + $0xe4] sm:$0xf] }
  0x28   : > { %504 = vmatpush.bf16.msra.mxu0 %v1059_v10  ;;  %1079 = vmatpush.bf16.msra.mxu2 %v1059_v10  ;;  %v866_v10 = vor.u32 %v1033_v4, %v863_v5  ;;  %v938_v23 = vor.u32 %v1051_v18, %v935_v19  ;;  %v943_v31 = vld [vmem:[%s1309_s10 + $0xe8] sm:$0xf0]  ;;  %v882_v34 = vor.u32 %v1037_v28, %v879_v29  ;;  %v1039_v40 = vld [vmem:[%s1309_s10 + $0x74] sm:$0xf]  ;;  %v887_v41 = vld [vmem:[%s1309_s10 + $0x78] sm:$0xf0] }
  0x29   : > { %593 = vmatpush.bf16.msra.mxu1 %v1067_v11  ;;  %1087 = vmatpush.bf16.msra.mxu3 %v1067_v11  ;;  %v930_v11 = vor.u32 %v1049_v6, %v927_v7  ;;  %v946_v35 = vor.u32 %v1053_v30, %v943_v31  ;;  %v1055_v42 = vld [vmem:[%s1309_s10 + $0xf4] sm:$0xf]  ;;  %v951_v43 = vld [vmem:[%s1309_s10 + $0xf8] sm:$0xf0]  ;;  %v890_v46 = vor.u32 %v1039_v40, %v887_v41 }
  0x2a   : > { %v954_v47 = vor.u32 %v1055_v42, %v951_v43 }
  0x2c   : > { %505 = vmatpush.bf16.msra.mxu0 %v1058_v12  ;;  %1080 = vmatpush.bf16.msra.mxu2 %v1058_v12  ;;  %v869_v12 = vld [vmem:[%s1309_s10 + $0x50] sm:$0xf] }
  0x2d   : > { %594 = vmatpush.bf16.msra.mxu1 %v1066_v13  ;;  %1088 = vmatpush.bf16.msra.mxu3 %v1066_v13  ;;  %v1036_v13 = vld [vmem:[%s1309_s10 + $0x54] sm:$0xf0] }
  0x2e   : > { %v870_v20 = vor.u32 %v1036_v13, %v869_v12 }
  0x30   : > { %506 = vmatpush.bf16.msra.mxu0 %v1057_v14  ;;  %1081 = vmatpush.bf16.msra.mxu2 %v1057_v14  ;;  %v933_v14 = vld [vmem:[%s1309_s10 + $0xd0] sm:$0xf] }
  0x31   : > { %595 = vmatpush.bf16.msra.mxu1 %v1065_v15  ;;  %1089 = vmatpush.bf16.msra.mxu3 %v1065_v15  ;;  %v1052_v15 = vld [vmem:[%s1309_s10 + $0xd4] sm:$0xf0] }
  0x32   : > { %v934_v21 = vor.u32 %v1052_v15, %v933_v14 }
  0x33   : > { %507 = vmatmul.bf16.vlgmr.msra.gmra.mxu0 %v830_v24  ;;  %547 = vmatmul.bf16.vlgmr.msra.gmra.mxu2 %v894_v25  ;;  %v877_v24 = vld [vmem:[%s1309_s10 + $0x60] sm:$0xf]  ;;  %v1038_v25 = vld [vmem:[%s1309_s10 + $0x64] sm:$0xf0] }
  0x34   : > { %596 = vmatmul.bf16.vlgmr.msra.gmra.mxu1 %v834_v26  ;;  %636 = vmatmul.bf16.vlgmr.msra.gmra.mxu3 %v898_v27  ;;  %v941_v26 = vld [vmem:[%s1309_s10 + $0xe0] sm:$0xf]  ;;  %v1054_v27 = vld [vmem:[%s1309_s10 + $0xe4] sm:$0xf0]  ;;  %v878_v32 = vor.u32 %v1038_v25, %v877_v24 }
  0x35   : > { %v942_v33 = vor.u32 %v1054_v27, %v941_v26 }
  0x43   : > { %512 = vmatmul.bf16.gmra.mxu0 %v838_v36  ;;  %552 = vmatmul.bf16.gmra.mxu2 %v902_v37  ;;  %v885_v36 = vld [vmem:[%s1309_s10 + $0x70] sm:$0xf]  ;;  %v1040_v37 = vld [vmem:[%s1309_s10 + $0x74] sm:$0xf0] }
  0x44   : > { %601 = vmatmul.bf16.gmra.mxu1 %v842_v38  ;;  %641 = vmatmul.bf16.gmra.mxu3 %v906_v39  ;;  %v949_v38 = vld [vmem:[%s1309_s10 + $0xf0] sm:$0xf]  ;;  %v1056_v39 = vld [vmem:[%s1309_s10 + $0xf4] sm:$0xf0]  ;;  %v886_v44 = vor.u32 %v1040_v37, %v885_v36  ;;  %s1146_s10 = sshra.s32 %s757_s8, 4  ;;  %s1147_s10 = int_to_ptr.hbm [resolvable:$true] %s1146_s10 }
  0x45   : > { %v950_v45 = vor.u32 %v1056_v39, %v949_v38  ;;  %s1148_s9 = scalar_lea.hbm %s1147_s10, 256  ;;  %p1153_p0 = scmp.lt.s32.totalorder %s1147_s10, %s1495_s3 }
  0x46   : > { %p1149_p11 = scmp.ne.s32.totalorder %s1147_s10, %s1148_s9  ;;  %p1154_p1 = scmp.lt.s32.totalorder %s1152_s19, %s1148_s9 }
  0x48   : > { %p1150_p12 = pnand %p1149_p11, %p1256_p5  ;;  %p1155_p2 = por %p1154_p1, %p1153_p0 }
  0x4a   : > { %p1151_p13 = pneg %p1150_p12 }
  0x4c   : > { %p1156_p3 = pnand %p1155_p2, %p1151_p13 }
  0x53   : > { %517 = vmatmul.bf16.gmra.mxu0 %v846_v48  ;;  %557 = vmatmul.bf16.gmra.mxu2 %v910_v49  ;;  %v1387_v48 = vld [vmem:[%s1494_s2] ss:$0 sm:$0xff] }
  0x54   : > { %606 = vmatmul.bf16.gmra.mxu1 %v850_v50  ;;  %646 = vmatmul.bf16.gmra.mxu3 %v914_v51 }
  0x63   : > { %522 = vmatmul.bf16.gmra.mxu0 %v854_v60  ;;  %562 = vmatmul.bf16.gmra.mxu2 %v918_v61 }
  0x64   : > { %611 = vmatmul.bf16.gmra.mxu1 %v858_v62  ;;  %651 = vmatmul.bf16.gmra.mxu3 %v922_v63 }
  0x73   : > { %527 = vmatmul.bf16.gmra.mxu0 %v862_v8  ;;  %567 = vmatmul.bf16.gmra.mxu2 %v926_v9 }
  0x74   : > { %616 = vmatmul.bf16.gmra.mxu1 %v866_v10  ;;  %656 = vmatmul.bf16.gmra.mxu3 %v930_v11 }
  0x83   : > { %532 = vmatmul.bf16.gmra.mxu0 %v870_v20  ;;  %572 = vmatmul.bf16.gmra.mxu2 %v934_v21 }
  0x84   : > { %621 = vmatmul.bf16.gmra.mxu1 %v874_v22  ;;  %661 = vmatmul.bf16.gmra.mxu3 %v938_v23 }
  0x93   : > { %537 = vmatmul.bf16.gmra.mxu0 %v878_v32  ;;  %577 = vmatmul.bf16.gmra.mxu2 %v942_v33 }
  0x94   : > { %626 = vmatmul.bf16.gmra.mxu1 %v882_v34  ;;  %666 = vmatmul.bf16.gmra.mxu3 %v946_v35 }
  0xa3   : > { %542 = vmatmul.bf16.gmra.mxu0 %v886_v44  ;;  %582 = vmatmul.bf16.gmra.mxu2 %v950_v45 }
  0xa4   : > { %631 = vmatmul.bf16.gmra.mxu1 %v890_v46  ;;  %671 = vmatmul.bf16.gmra.mxu3 %v954_v47 }
  0xb0   : > { %v508_v49 = vpop.f32.mrf.mxu0 }
  0xb1   : > { %v509_v50 = vadd.f32 %v1387_v48, %v508_v49  ;;  %v597_v51 = vpop.f32.mrf.mxu1 }
  0xb3   : > { %v598_v52 = vadd.f32 %v597_v51, %v509_v50 }
  0xb5   : > { %v677_v53 = vmax.f32 %v598_v52, 0.0 }
  0xb6   : > { %v548_v54 = vpop.f32.mrf.mxu2 }
  0xb7   : > { %709 = vst [vmem:[%s1393_s29] sm:$0xff] %v677_v53  ;;  %v549_v55 = vadd.f32 %v1387_v48, %v548_v54  ;;  %v637_v56 = vpop.f32.mrf.mxu3 }
  0xb8   : > { %v510_v57 = vpop.f32.mrf.mxu0 }
  0xb9   : > { %v638_v58 = vadd.f32 %v637_v56, %v549_v55  ;;  %v511_v59 = vadd.f32 %v1387_v48, %v510_v57  ;;  %v599_v60 = vpop.f32.mrf.mxu1 }
  0xbb   : > { %v693_v61 = vmax.f32 %v638_v58, 0.0  ;;  %v600_v62 = vadd.f32 %v599_v60, %v511_v59 }
  0xbd   : > { %725 = vst [vmem:[%s1393_s29 + $0x80] sm:$0xff] %v693_v61  ;;  %v678_v63 = vmax.f32 %v600_v62, 0.0 }
  0xbe   : > { %v550_v0 = vpop.f32.mrf.mxu2 }
  0xbf   : > { %710 = vst [vmem:[%s1393_s29 + $0x8] sm:$0xff] %v678_v63  ;;  %v551_v1 = vadd.f32 %v1387_v48, %v550_v0  ;;  %v639_v2 = vpop.f32.mrf.mxu3 }
  0xc0   : > { %v513_v3 = vpop.f32.mrf.mxu0 }
  0xc1   : > { %v640_v4 = vadd.f32 %v639_v2, %v551_v1  ;;  %v514_v5 = vadd.f32 %v1387_v48, %v513_v3  ;;  %v602_v6 = vpop.f32.mrf.mxu1 }
  0xc3   : > { %v694_v7 = vmax.f32 %v640_v4, 0.0  ;;  %v603_v8 = vadd.f32 %v602_v6, %v514_v5 }
  0xc5   : > { %726 = vst [vmem:[%s1393_s29 + $0x88] sm:$0xff] %v694_v7  ;;  %v679_v9 = vmax.f32 %v603_v8, 0.0 }
  0xc6   : > { %v553_v10 = vpop.f32.mrf.mxu2 }
  0xc7   : > { %711 = vst [vmem:[%s1393_s29 + $0x10] sm:$0xff] %v679_v9  ;;  %v554_v11 = vadd.f32 %v1387_v48, %v553_v10  ;;  %v642_v12 = vpop.f32.mrf.mxu3 }
  0xc8   : > { %v515_v13 = vpop.f32.mrf.mxu0 }
  0xc9   : > { %v643_v14 = vadd.f32 %v642_v12, %v554_v11  ;;  %v516_v15 = vadd.f32 %v1387_v48, %v515_v13  ;;  %v604_v16 = vpop.f32.mrf.mxu1 }
  0xcb   : > { %v695_v17 = vmax.f32 %v643_v14, 0.0  ;;  %v605_v18 = vadd.f32 %v604_v16, %v516_v15 }
  0xcd   : > { %727 = vst [vmem:[%s1393_s29 + $0x90] sm:$0xff] %v695_v17  ;;  %v680_v19 = vmax.f32 %v605_v18, 0.0 }
  0xce   : > { %v555_v20 = vpop.f32.mrf.mxu2 }
  0xcf   : > { %712 = vst [vmem:[%s1393_s29 + $0x18] sm:$0xff] %v680_v19  ;;  %v556_v21 = vadd.f32 %v1387_v48, %v555_v20  ;;  %v644_v22 = vpop.f32.mrf.mxu3 }
  0xd0   : > { %v518_v23 = vpop.f32.mrf.mxu0 }
  0xd1   : > { %v645_v24 = vadd.f32 %v644_v22, %v556_v21  ;;  %v519_v25 = vadd.f32 %v1387_v48, %v518_v23  ;;  %v607_v26 = vpop.f32.mrf.mxu1 }
  0xd3   : > { %v696_v27 = vmax.f32 %v645_v24, 0.0  ;;  %v608_v28 = vadd.f32 %v607_v26, %v519_v25 }
  0xd5   : > { %728 = vst [vmem:[%s1393_s29 + $0x98] sm:$0xff] %v696_v27  ;;  %v681_v29 = vmax.f32 %v608_v28, 0.0 }
  0xd6   : > { %v558_v30 = vpop.f32.mrf.mxu2 }
  0xd7   : > { %713 = vst [vmem:[%s1393_s29 + $0x20] sm:$0xff] %v681_v29  ;;  %v559_v31 = vadd.f32 %v1387_v48, %v558_v30  ;;  %v647_v32 = vpop.f32.mrf.mxu3 }
  0xd8   : > { %v520_v33 = vpop.f32.mrf.mxu0 }
  0xd9   : > { %v648_v34 = vadd.f32 %v647_v32, %v559_v31  ;;  %v521_v35 = vadd.f32 %v1387_v48, %v520_v33  ;;  %v609_v36 = vpop.f32.mrf.mxu1 }
  0xdb   : > { %v697_v37 = vmax.f32 %v648_v34, 0.0  ;;  %v610_v38 = vadd.f32 %v609_v36, %v521_v35 }
  0xdd   : > { %729 = vst [vmem:[%s1393_s29 + $0xa0] sm:$0xff] %v697_v37  ;;  %v682_v39 = vmax.f32 %v610_v38, 0.0 }
  0xde   : > { %v560_v40 = vpop.f32.mrf.mxu2 }
  0xdf   : > { %714 = vst [vmem:[%s1393_s29 + $0x28] sm:$0xff] %v682_v39  ;;  %v561_v41 = vadd.f32 %v1387_v48, %v560_v40  ;;  %v649_v42 = vpop.f32.mrf.mxu3 }
  0xe0   : > { %v523_v43 = vpop.f32.mrf.mxu0 }
  0xe1   : > { %v650_v44 = vadd.f32 %v649_v42, %v561_v41  ;;  %v524_v45 = vadd.f32 %v1387_v48, %v523_v43  ;;  %v612_v46 = vpop.f32.mrf.mxu1 }
  0xe3   : > { %v698_v47 = vmax.f32 %v650_v44, 0.0  ;;  %v613_v49 = vadd.f32 %v612_v46, %v524_v45 }
  0xe5   : > { %730 = vst [vmem:[%s1393_s29 + $0xa8] sm:$0xff] %v698_v47  ;;  %v683_v50 = vmax.f32 %v613_v49, 0.0 }
  0xe6   : > { %v563_v51 = vpop.f32.mrf.mxu2 }
  0xe7   : > { %715 = vst [vmem:[%s1393_s29 + $0x30] sm:$0xff] %v683_v50  ;;  %v564_v52 = vadd.f32 %v1387_v48, %v563_v51  ;;  %v652_v53 = vpop.f32.mrf.mxu3 }
  0xe8   : > { %v525_v54 = vpop.f32.mrf.mxu0 }
  0xe9   : > { %v653_v55 = vadd.f32 %v652_v53, %v564_v52  ;;  %v526_v56 = vadd.f32 %v1387_v48, %v525_v54  ;;  %v614_v57 = vpop.f32.mrf.mxu1 }
  0xeb   : > { %v699_v58 = vmax.f32 %v653_v55, 0.0  ;;  %v615_v59 = vadd.f32 %v614_v57, %v526_v56 }
  0xed   : > { %731 = vst [vmem:[%s1393_s29 + $0xb0] sm:$0xff] %v699_v58  ;;  %v684_v60 = vmax.f32 %v615_v59, 0.0 }
  0xee   : > { %v565_v61 = vpop.f32.mrf.mxu2 }
  0xef   : > { %716 = vst [vmem:[%s1393_s29 + $0x38] sm:$0xff] %v684_v60  ;;  %v566_v62 = vadd.f32 %v1387_v48, %v565_v61  ;;  %v654_v63 = vpop.f32.mrf.mxu3 }
  0xf0   : > { %v528_v0 = vpop.f32.mrf.mxu0 }
  0xf1   : > { %v655_v1 = vadd.f32 %v654_v63, %v566_v62  ;;  %v529_v2 = vadd.f32 %v1387_v48, %v528_v0  ;;  %v617_v3 = vpop.f32.mrf.mxu1 }
  0xf3   : > { %v700_v4 = vmax.f32 %v655_v1, 0.0  ;;  %v618_v5 = vadd.f32 %v617_v3, %v529_v2 }
  0xf5   : > { %732 = vst [vmem:[%s1393_s29 + $0xb8] sm:$0xff] %v700_v4  ;;  %v685_v6 = vmax.f32 %v618_v5, 0.0 }
  0xf6   : > { %v568_v7 = vpop.f32.mrf.mxu2 }
  0xf7   : > { %717 = vst [vmem:[%s1393_s29 + $0x40] sm:$0xff] %v685_v6  ;;  %v569_v8 = vadd.f32 %v1387_v48, %v568_v7  ;;  %v657_v9 = vpop.f32.mrf.mxu3 }
  0xf8   : > { %v530_v10 = vpop.f32.mrf.mxu0 }
  0xf9   : > { %v658_v11 = vadd.f32 %v657_v9, %v569_v8  ;;  %v531_v12 = vadd.f32 %v1387_v48, %v530_v10  ;;  %v619_v13 = vpop.f32.mrf.mxu1 }
  0xfb   : > { %v701_v14 = vmax.f32 %v658_v11, 0.0  ;;  %v620_v15 = vadd.f32 %v619_v13, %v531_v12 }
  0xfd   : > { %733 = vst [vmem:[%s1393_s29 + $0xc0] sm:$0xff] %v701_v14  ;;  %v686_v16 = vmax.f32 %v620_v15, 0.0 }
  0xfe   : > { %v570_v17 = vpop.f32.mrf.mxu2 }
  0xff   : > { %718 = vst [vmem:[%s1393_s29 + $0x48] sm:$0xff] %v686_v16  ;;  %v571_v18 = vadd.f32 %v1387_v48, %v570_v17  ;;  %v659_v19 = vpop.f32.mrf.mxu3 }
 0x100   : > { %v533_v20 = vpop.f32.mrf.mxu0 }
 0x101   : > { %v660_v21 = vadd.f32 %v659_v19, %v571_v18  ;;  %v534_v22 = vadd.f32 %v1387_v48, %v533_v20  ;;  %v622_v23 = vpop.f32.mrf.mxu1 }
 0x103   : > { %v702_v24 = vmax.f32 %v660_v21, 0.0  ;;  %v623_v25 = vadd.f32 %v622_v23, %v534_v22 }
 0x105   : > { %734 = vst [vmem:[%s1393_s29 + $0xc8] sm:$0xff] %v702_v24  ;;  %v687_v26 = vmax.f32 %v623_v25, 0.0 }
 0x106   : > { %v573_v27 = vpop.f32.mrf.mxu2 }
 0x107   : > { %719 = vst [vmem:[%s1393_s29 + $0x50] sm:$0xff] %v687_v26  ;;  %v574_v28 = vadd.f32 %v1387_v48, %v573_v27  ;;  %v662_v29 = vpop.f32.mrf.mxu3 }
 0x108   : > { %v535_v30 = vpop.f32.mrf.mxu0 }
 0x109   : > { %v663_v31 = vadd.f32 %v662_v29, %v574_v28  ;;  %v536_v32 = vadd.f32 %v1387_v48, %v535_v30  ;;  %v624_v33 = vpop.f32.mrf.mxu1 }
 0x10b   : > { %v703_v34 = vmax.f32 %v663_v31, 0.0  ;;  %v625_v35 = vadd.f32 %v624_v33, %v536_v32 }
 0x10d   : > { %735 = vst [vmem:[%s1393_s29 + $0xd0] sm:$0xff] %v703_v34  ;;  %v688_v36 = vmax.f32 %v625_v35, 0.0 }
 0x10e   : > { %v575_v37 = vpop.f32.mrf.mxu2 }
 0x10f   : > { %720 = vst [vmem:[%s1393_s29 + $0x58] sm:$0xff] %v688_v36  ;;  %v576_v38 = vadd.f32 %v1387_v48, %v575_v37  ;;  %v664_v39 = vpop.f32.mrf.mxu3 }
 0x110   : > { %v538_v40 = vpop.f32.mrf.mxu0 }
 0x111   : > { %v665_v41 = vadd.f32 %v664_v39, %v576_v38  ;;  %v539_v42 = vadd.f32 %v1387_v48, %v538_v40  ;;  %v627_v43 = vpop.f32.mrf.mxu1 }
 0x113   : > { %v704_v44 = vmax.f32 %v665_v41, 0.0  ;;  %v628_v45 = vadd.f32 %v627_v43, %v539_v42 }
 0x115   : > { %736 = vst [vmem:[%s1393_s29 + $0xd8] sm:$0xff] %v704_v44  ;;  %v689_v46 = vmax.f32 %v628_v45, 0.0 }
 0x116   : > { %v578_v47 = vpop.f32.mrf.mxu2 }
 0x117   : > { %721 = vst [vmem:[%s1393_s29 + $0x60] sm:$0xff] %v689_v46  ;;  %v579_v49 = vadd.f32 %v1387_v48, %v578_v47  ;;  %v667_v50 = vpop.f32.mrf.mxu3 }
 0x118   : > { %v540_v51 = vpop.f32.mrf.mxu0 }
 0x119   : > { %v668_v52 = vadd.f32 %v667_v50, %v579_v49  ;;  %v541_v53 = vadd.f32 %v1387_v48, %v540_v51  ;;  %v629_v54 = vpop.f32.mrf.mxu1 }
 0x11b   : > { %v705_v55 = vmax.f32 %v668_v52, 0.0  ;;  %v630_v56 = vadd.f32 %v629_v54, %v541_v53 }
 0x11d   : > { %737 = vst [vmem:[%s1393_s29 + $0xe0] sm:$0xff] %v705_v55  ;;  %v690_v57 = vmax.f32 %v630_v56, 0.0 }
 0x11e   : > { %v580_v58 = vpop.f32.mrf.mxu2 }
 0x11f   : > { %722 = vst [vmem:[%s1393_s29 + $0x68] sm:$0xff] %v690_v57  ;;  %v581_v59 = vadd.f32 %v1387_v48, %v580_v58  ;;  %v669_v60 = vpop.f32.mrf.mxu3 }
 0x120   : > { %v543_v61 = vpop.f32.mrf.mxu0 }
 0x121   : > { %v670_v62 = vadd.f32 %v669_v60, %v581_v59  ;;  %v544_v63 = vadd.f32 %v1387_v48, %v543_v61  ;;  %v632_v0 = vpop.f32.mrf.mxu1 }
 0x123   : > { %v706_v1 = vmax.f32 %v670_v62, 0.0  ;;  %v633_v2 = vadd.f32 %v632_v0, %v544_v63 }
 0x125   : > { %738 = vst [vmem:[%s1393_s29 + $0xe8] sm:$0xff] %v706_v1  ;;  %v691_v3 = vmax.f32 %v633_v2, 0.0 }
 0x126   : > { %v583_v4 = vpop.f32.mrf.mxu2 }
 0x127   : > { %723 = vst [vmem:[%s1393_s29 + $0x70] sm:$0xff] %v691_v3  ;;  %v584_v5 = vadd.f32 %v1387_v48, %v583_v4  ;;  %v672_v6 = vpop.f32.mrf.mxu3 }
 0x128   : > { %v545_v7 = vpop.f32.mrf.mxu0 }
 0x129   : > { %v673_v8 = vadd.f32 %v672_v6, %v584_v5  ;;  %v546_v9 = vadd.f32 %v1387_v48, %v545_v7  ;;  %v634_v10 = vpop.f32.mrf.mxu1 }
 0x12b   : > { %v707_v11 = vmax.f32 %v673_v8, 0.0  ;;  %v635_v12 = vadd.f32 %v634_v10, %v546_v9 }
 0x12d   : > { %739 = vst [vmem:[%s1393_s29 + $0xf0] sm:$0xff] %v707_v11  ;;  %v692_v13 = vmax.f32 %v635_v12, 0.0 }
 0x12e   : > { %v585_v14 = vpop.f32.mrf.mxu2 }
 0x12f   : > { %724 = vst [vmem:[%s1393_s29 + $0x78] sm:$0xff] %v692_v13  ;;  %v586_v15 = vadd.f32 %v1387_v48, %v585_v14  ;;  %v674_v16 = vpop.f32.mrf.mxu3 }
 0x131   : > { %v675_v17 = vadd.f32 %v674_v16, %v586_v15 }
 0x133   : > { %v708_v18 = vmax.f32 %v675_v17, 0.0 }
 0x135   : > { %740 = vst [vmem:[%s1393_s29 + $0xf8] sm:$0xff] %v708_v18 }
 0x136   : > { %1159 = shalt.err (!%p1156_p3)
}
 0x137   : > { %s1196_s25 = smov 128   ;;  %s1197_s26 = smov 8  }
 0x138   : > { %1090 = dma.vmem_to_hbm [thread:$0]  (%p1256_p5), %s755_s7, 4096, %s757_s8, %s742_s16, %s1196_s25, %s1196_s25, %s1197_s26  }
 0x139 PF: > { %p1096_p4 = scmp.ge.s32.totalorder %s1194_s15, 2  ;;  %s771_s27 = sand.u32 1, %s1182_s12  }
 0x13a   : > { %s772_s28 = scalar_lea.sflag [#allocation3], %s771_s27 }
 0x13b   : > { %p1093_p7 = pnand %p1096_p4, %p1260_p6 }
 0x13d   : > { %p1094_p8 = pneg %p1093_p7 }
 0x13f   : > { %1177 = dma.done.wait (%p1094_p8), %s772_s28, 4096  }
 0x140   : > { %1179 = vsyncadd (%p1094_p8), %s772_s28, 4294963200  ;;  %p13_p9 = scmp.ge.s32.totalorder %s1243_s18, 4   ;;  %s1498_s12 = smov %s1186_s13 }
 0x141   : > { %s1499_s13 = smov %s1190_s14  ;;  %s1500_s14 = smov %s1254_s21 }
 0x142   : > { %s1501_s15 = smov %s1243_s18  ;;  %15 = sbr.rel (!%p13_p9) target bundleno = 3 (0x3), region = 67 }
 0x147   :  { %778 = vsyncpa [#allocation3], 1 }
 0x148   :  { %780 = vsyncpa [#allocation3 + $0x1], 1 }

</bundles_post_ra>
